<compile_context>
chip_gen: v5e
topology: v5e:2x2
jax: 0.10.0
libtpu: 0.0.40
codegen_flags: <defaults>
</compile_context>

<pallas_src>
import jax
import jax.numpy as jnp
from jax.experimental import pallas as pl
from jax.experimental.pallas import tpu as pltpu


def _round_up(x, m):
    return (x + m - 1) // m * m


def _pick_block_b(B, block_b=None, max_block=2048, min_steps=2):
    """Largest batch tile (multiple of 8) up to max_block rows, while keeping
    at least `min_steps` grid steps so v7x can shard over both TensorCores."""
    if block_b is not None:
        return int(max(8, _round_up(block_b, 8)))
    bb = _round_up(-(-B // min_steps), 8)     # ceil(B / min_steps), 8-aligned
    return int(max(8, min(max_block, bb)))


def _mlp_logsoftmax_kernel(xw_ref, xt_ref, w1w_ref, w1t_ref, b1_ref,
                           w2_ref, b2_ref, out_ref):
    # xw: (bb, E)  xt: (bb, T)  w1w: (E, H)  w1t: (T, H)  b1: (1, H)
    # w2: (H, T)   b2: (1, T)   out: (bb, T)
    z1 = (jnp.dot(xw_ref[...], w1w_ref[...], preferred_element_type=jnp.float32)
          + jnp.dot(xt_ref[...], w1t_ref[...], preferred_element_type=jnp.float32)
          + b1_ref[...])
    a1 = jnp.maximum(z1, 0.0)                                       # ReLU (f32)
    z2 = (jnp.dot(a1, w2_ref[...], preferred_element_type=jnp.float32)
          + b2_ref[...])
    # log_softmax over the (real, unpadded) tag lanes.
    m = jnp.max(z2, axis=-1, keepdims=True)
    s = z2 - m
    lse = jnp.log(jnp.sum(jnp.exp(s), axis=-1, keepdims=True))
    out_ref[...] = s - lse


def init_params(key, embedding_dim, tag_size, hidden_size):
    """nn.Linear-equivalent init; weights stored (in, out) so the kernel does x @ W.
    Row order of w1 matches torch.cat((word, tag), dim=1)."""
    din = tag_size + embedding_dim
    k1, k2, k3, k4 = jax.random.split(key, 4)
    bound1 = 1.0 / jnp.sqrt(din)
    bound2 = 1.0 / jnp.sqrt(hidden_size)
    w1 = jax.random.uniform(k1, (din, hidden_size), jnp.float32, -bound1, bound1)
    b1 = jax.random.uniform(k2, (hidden_size,), jnp.float32, -bound1, bound1)
    w2 = jax.random.uniform(k3, (hidden_size, tag_size), jnp.float32, -bound2, bound2)
    b2 = jax.random.uniform(k4, (tag_size,), jnp.float32, -bound2, bound2)
    return (w1, b1, w2, b2)


def prepare_params(params):
    """One-time conversion to kernel-ready layout: split W1 at the concat
    boundary (word rows first, tag rows second) and pre-shape biases to (1, n).
    Everything stays f32 (this op is HBM-bound, not MXU-bound)."""
    w1, b1, w2, b2 = params
    din, hidden = w1.shape
    tag = w2.shape[1]
    emb = din - tag
    w1_word = w1[:emb, :]                 # (E, H)
    w1_tag = w1[emb:, :]                  # (T, H)
    b1p = b1.reshape(1, hidden)           # (1, H)
    b2p = b2.reshape(1, tag)              # (1, T)
    return (w1_word, w1_tag, b1p, w2, b2p)


def model2_forward(word_embedding, pre_tag_embed, kernel_params, block_b=None):
    """Equivalent of model2.forward for a whole batch in a single pallas_call."""
    w1_word, w1_tag, b1p, w2, b2p = kernel_params
    B, E = word_embedding.shape
    T = pre_tag_embed.shape[1]
    H = w1_word.shape[1]
    tag = w2.shape[1]

    bb = _pick_block_b(B, block_b)
    grid = (pl.cdiv(B, bb),)

    out = pl.pallas_call(
        _mlp_logsoftmax_kernel,
        out_shape=jax.ShapeDtypeStruct((B, tag), jnp.float32),
        grid=grid,
        in_specs=[
            pl.BlockSpec((bb, E), lambda i: (i, 0)),   # word rows per step
            pl.BlockSpec((bb, T), lambda i: (i, 0)),   # tag rows per step
            pl.BlockSpec((E, H), lambda i: (0, 0)),    # weights: VMEM-resident
            pl.BlockSpec((T, H), lambda i: (0, 0)),
            pl.BlockSpec((1, H), lambda i: (0, 0)),
            pl.BlockSpec((H, tag), lambda i: (0, 0)),
            pl.BlockSpec((1, tag), lambda i: (0, 0)),
        ],
        out_specs=pl.BlockSpec((bb, tag), lambda i: (i, 0)),
        compiler_params=pltpu.CompilerParams(
            dimension_semantics=("parallel",)),        # v7x: shard over both TCs
    )(word_embedding, pre_tag_embed, w1_word, w1_tag, b1p, w2, b2p)
    return out


def _reference(params, word_embedding, pre_tag_embed):
    w1, b1, w2, b2 = params
    cat = jnp.concatenate((word_embedding, pre_tag_embed), axis=1)
    z2 = jnp.maximum(cat @ w1 + b1, 0.0) @ w2 + b2
    return jax.nn.log_softmax(z2, axis=1)


if __name__ == "__main__":
    embedding_dim = 32
    tag_size = 16
    hidden_size = 32
    batch = 8

    key = jax.random.PRNGKey(0)
    kp, kw, kt = jax.random.split(key, 3)
    params = init_params(kp, embedding_dim, tag_size, hidden_size)
    kernel_params = prepare_params(params)

    word_embedding = jax.random.normal(kw, (batch, embedding_dim), jnp.float32)
    pre_tag_embed = jax.random.normal(kt, (batch, tag_size), jnp.float32)

    out = model2_forward(word_embedding, pre_tag_embed, kernel_params)
    out = jax.block_until_ready(out)
    ref = _reference(params, word_embedding, pre_tag_embed)
    assert out.shape == (batch, tag_size)
    assert jnp.max(jnp.abs(out - ref)) < 1e-4

    # Second check: non-tile-multiple batch exercises the multi-step grid and
    # the clipped partial last block (no wrapper-side padding anywhere).
    batch2 = 300
    kw2, kt2 = jax.random.split(jax.random.PRNGKey(1))
    we2 = jax.random.normal(kw2, (batch2, embedding_dim), jnp.float32)
    te2 = jax.random.normal(kt2, (batch2, tag_size), jnp.float32)
    out2 = jax.block_until_ready(model2_forward(we2, te2, kernel_params))
    ref2 = _reference(params, we2, te2)
    assert out2.shape == (batch2, tag_size)
    assert jnp.max(jnp.abs(out2 - ref2)) < 1e-4

    print("KERNEL_OK")
</pallas_src>

<mosaic_0001>
module attributes {stable_mosaic.version = 11 : i64} {
  func.func @_mlp_logsoftmax_kernel(%arg0: i32, %arg1: memref<8x32xf32, #tpu.memory_space<vmem>>, %arg2: memref<8x16xf32, #tpu.memory_space<vmem>>, %arg3: memref<32x32xf32, #tpu.memory_space<vmem>>, %arg4: memref<16x32xf32, #tpu.memory_space<vmem>>, %arg5: memref<1x32xf32, #tpu.memory_space<vmem>>, %arg6: memref<32x16xf32, #tpu.memory_space<vmem>>, %arg7: memref<1x16xf32, #tpu.memory_space<vmem>>, %arg8: memref<8x16xf32, #tpu.memory_space<vmem>>) attributes {dimension_semantics = [#tpu.dimension_semantics<parallel>], iteration_bounds = array<i64: 1>, scalar_prefetch = 0 : i64, scratch_operands = 0 : i64, tpu.core_type = #tpu.core_type<tc>, window_params = [{transform_indices = @transform_0, window_bounds = array<i64: 8, 32>}, {transform_indices = @transform_1, window_bounds = array<i64: 8, 16>}, {pipeline_mode = #tpu.pipeline_mode<synchronous>, transform_indices = @transform_2, window_bounds = array<i64: 32, 32>}, {pipeline_mode = #tpu.pipeline_mode<synchronous>, transform_indices = @transform_3, window_bounds = array<i64: 16, 32>}, {pipeline_mode = #tpu.pipeline_mode<synchronous>, transform_indices = @transform_4, window_bounds = array<i64: 1, 32>}, {pipeline_mode = #tpu.pipeline_mode<synchronous>, transform_indices = @transform_5, window_bounds = array<i64: 32, 16>}, {pipeline_mode = #tpu.pipeline_mode<synchronous>, transform_indices = @transform_6, window_bounds = array<i64: 1, 16>}, {transform_indices = @transform_7, window_bounds = array<i64: 8, 16>}]} {
    %c0 = arith.constant 0 : index
    %c0_0 = arith.constant 0 : index
    %0 = vector.load %arg1[%c0, %c0_0] : memref<8x32xf32, #tpu.memory_space<vmem>>, vector<8x32xf32>
    %c0_1 = arith.constant 0 : index
    %c0_2 = arith.constant 0 : index
    %1 = vector.load %arg3[%c0_1, %c0_2] : memref<32x32xf32, #tpu.memory_space<vmem>>, vector<32x32xf32>
    %cst = arith.constant dense<0.000000e+00> : vector<8x32xf32>
    %2 = tpu.matmul %0, %1, %cst {dimension_numbers = #tpu.dot_dimension_numbers<[1], [0], [0], [1], [0, 0, 1, 1], [], []>} : vector<8x32xf32>, vector<32x32xf32>, vector<8x32xf32> -> vector<8x32xf32>
    %c0_3 = arith.constant 0 : index
    %c0_4 = arith.constant 0 : index
    %3 = vector.load %arg2[%c0_3, %c0_4] : memref<8x16xf32, #tpu.memory_space<vmem>>, vector<8x16xf32>
    %c0_5 = arith.constant 0 : index
    %c0_6 = arith.constant 0 : index
    %4 = vector.load %arg4[%c0_5, %c0_6] : memref<16x32xf32, #tpu.memory_space<vmem>>, vector<16x32xf32>
    %cst_7 = arith.constant dense<0.000000e+00> : vector<8x32xf32>
    %5 = tpu.matmul %3, %4, %cst_7 {dimension_numbers = #tpu.dot_dimension_numbers<[1], [0], [0], [1], [0, 0, 1, 1], [], []>} : vector<8x16xf32>, vector<16x32xf32>, vector<8x32xf32> -> vector<8x32xf32>
    %6 = arith.addf %2, %5 : vector<8x32xf32>
    %c0_8 = arith.constant 0 : index
    %c0_9 = arith.constant 0 : index
    %7 = vector.load %arg5[%c0_8, %c0_9] : memref<1x32xf32, #tpu.memory_space<vmem>>, vector<1x32xf32>
    %8 = vector.broadcast %7 : vector<1x32xf32> to vector<8x32xf32>
    %9 = arith.addf %6, %8 : vector<8x32xf32>
    %cst_10 = arith.constant 0.000000e+00 : f32
    %10 = vector.broadcast %cst_10 : f32 to vector<8x32xf32>
    %11 = arith.maximumf %9, %10 : vector<8x32xf32>
    %c0_11 = arith.constant 0 : index
    %c0_12 = arith.constant 0 : index
    %12 = vector.load %arg6[%c0_11, %c0_12] : memref<32x16xf32, #tpu.memory_space<vmem>>, vector<32x16xf32>
    %cst_13 = arith.constant dense<0.000000e+00> : vector<8x16xf32>
    %13 = tpu.matmul %11, %12, %cst_13 {dimension_numbers = #tpu.dot_dimension_numbers<[1], [0], [0], [1], [0, 0, 1, 1], [], []>} : vector<8x32xf32>, vector<32x16xf32>, vector<8x16xf32> -> vector<8x16xf32>
    %c0_14 = arith.constant 0 : index
    %c0_15 = arith.constant 0 : index
    %14 = vector.load %arg7[%c0_14, %c0_15] : memref<1x16xf32, #tpu.memory_space<vmem>>, vector<1x16xf32>
    %15 = vector.broadcast %14 : vector<1x16xf32> to vector<8x16xf32>
    %16 = arith.addf %13, %15 : vector<8x16xf32>
    %cst_16 = arith.constant dense<0xFF800000> : vector<8xf32>
    %17 = vector.multi_reduction <maximumf>, %16, %cst_16 [1] : vector<8x16xf32> to vector<8xf32>
    %18 = vector.shape_cast %17 : vector<8xf32> to vector<8x1xf32>
    %19 = vector.broadcast %18 : vector<8x1xf32> to vector<8x16xf32>
    %20 = arith.subf %16, %19 : vector<8x16xf32>
    %21 = math.exp %20 : vector<8x16xf32>
    %cst_17 = arith.constant dense<0.000000e+00> : vector<8xf32>
    %22 = vector.multi_reduction <add>, %21, %cst_17 [1] : vector<8x16xf32> to vector<8xf32>
    %23 = vector.shape_cast %22 : vector<8xf32> to vector<8x1xf32>
    %24 = math.log %23 : vector<8x1xf32>
    %25 = vector.broadcast %24 : vector<8x1xf32> to vector<8x16xf32>
    %26 = arith.subf %20, %25 : vector<8x16xf32>
    %c0_18 = arith.constant 0 : index
    %c0_19 = arith.constant 0 : index
    %27 = vector.load %arg8[%c0_18, %c0_19] : memref<8x16xf32, #tpu.memory_space<vmem>>, vector<8x16xf32>
    tpu.vector_store %arg8[%c0_18, %c0_19], %26 {strides = array<i32>} : memref<8x16xf32, #tpu.memory_space<vmem>>, vector<8x16xf32>,
    return
  }
  func.func @transform_0(%arg0: i32) -> (i32, i32) {
    %c0_i32 = arith.constant 0 : i32
    %c0_i32_0 = arith.constant 0 : i32
    return %arg0, %c0_i32 : i32, i32
  }
  func.func @transform_1(%arg0: i32) -> (i32, i32) {
    %c0_i32 = arith.constant 0 : i32
    %c0_i32_0 = arith.constant 0 : i32
    return %arg0, %c0_i32 : i32, i32
  }
  func.func @transform_2(%arg0: i32) -> (i32, i32) {
    %c0_i32 = arith.constant 0 : i32
    %c0_i32_0 = arith.constant 0 : i32
    %c0_i32_1 = arith.constant 0 : i32
    return %c0_i32, %c0_i32_0 : i32, i32
  }
  func.func @transform_3(%arg0: i32) -> (i32, i32) {
    %c0_i32 = arith.constant 0 : i32
    %c0_i32_0 = arith.constant 0 : i32
    %c0_i32_1 = arith.constant 0 : i32
    return %c0_i32, %c0_i32_0 : i32, i32
  }
  func.func @transform_4(%arg0: i32) -> (i32, i32) {
    %c0_i32 = arith.constant 0 : i32
    %c0_i32_0 = arith.constant 0 : i32
    %c0_i32_1 = arith.constant 0 : i32
    return %c0_i32, %c0_i32_0 : i32, i32
  }
  func.func @transform_5(%arg0: i32) -> (i32, i32) {
    %c0_i32 = arith.constant 0 : i32
    %c0_i32_0 = arith.constant 0 : i32
    %c0_i32_1 = arith.constant 0 : i32
    return %c0_i32, %c0_i32_0 : i32, i32
  }
  func.func @transform_6(%arg0: i32) -> (i32, i32) {
    %c0_i32 = arith.constant 0 : i32
    %c0_i32_0 = arith.constant 0 : i32
    %c0_i32_1 = arith.constant 0 : i32
    return %c0_i32, %c0_i32_0 : i32, i32
  }
  func.func @transform_7(%arg0: i32) -> (i32, i32) {
    %c0_i32 = arith.constant 0 : i32
    %c0_i32_0 = arith.constant 0 : i32
    return %arg0, %c0_i32 : i32, i32
  }
}

</mosaic_0001>

<bundles_post_ra>
// kernel: tpu_custom_call.1
= control target key start
LH: loop header
LB: loop body
LE: loop exit
PB: predicated region body
PF: predicated region fallthrough
CT: control target
= control target key end

     0   :  { %12 = vsyncpa [#allocation3], 0  ;;  %s363_s0 = inlined_call_operand.hbm [shape: f32[8,32], index: 0, kind: input, shape index: {}]   ;;  %s364_s1 = inlined_call_operand.hbm [shape: f32[8,16], index: 1, kind: input, shape index: {}]   ;;  %s365_s2 = inlined_call_operand.vmem [shape: f32[32,32], index: 2, kind: input, shape index: {}]   ;;  %s366_s3 = inlined_call_operand.vmem [shape: f32[16,32], index: 3, kind: input, shape index: {}]   ;;  %s367_s4 = inlined_call_operand.vmem [shape: f32[1,32], index: 4, kind: input, shape index: {}]   ;;  %s368_s5 = inlined_call_operand.vmem [shape: f32[32,16], index: 5, kind: input, shape index: {}]   ;;  %s369_s6 = inlined_call_operand.vmem [shape: f32[1,16], index: 6, kind: input, shape index: {}]   ;;  %s370_s7 = inlined_call_operand.hbm [shape: f32[8,16], index: 7, kind: output, shape index: {}]  }
   0x1   :  { %13 = vsyncpa [#allocation6], 0 }
   0x2   :  { %14 = vsyncpa [#allocation4], 0  ;;  %s20_s26 = sshll.u32 %s363_s0, 4  ;;  %s269_s27 = smov [#allocation2]   ;;  %s21_s26 = int_to_ptr.hbm [resolvable:$true] %s20_s26 }
   0x3   :  { %s22_s28 = sshll.u32 %s269_s27, 4  ;;  %s31_s8 = sshll.u32 %s364_s1, 4  ;;  %s23_s28 = int_to_ptr.vmem [resolvable:$true] %s22_s28  ;;  %s32_s8 = int_to_ptr.hbm [resolvable:$true] %s31_s8 }
   0x4   :  { %25 = dma.hbm_to_vmem [thread:$0]  %s21_s26, 128, %s23_s28, [#allocation3]  }
   0x5   :  { %s270_s9 = smov [#allocation5]  }
   0x6   :  { %s33_s10 = sshll.u32 %s270_s9, 4  ;;  %s34_s10 = int_to_ptr.vmem [resolvable:$true] %s33_s10 }
   0x7   :  { %36 = dma.hbm_to_vmem [thread:$0]  %s32_s8, 128, %s34_s10, [#allocation6]  }
   0x8   :  { %263 = dma.done.wait [#allocation3], 128  }
   0x9   :  { %264 = vsyncadd [#allocation3], 4294967168 }
   0xa   :  { %265 = dma.done.wait [#allocation6], 128  }
   0xb   :  { %266 = vsyncadd [#allocation6], 4294967168  ;;  %v59_v0 = vld [vmem:[%s365_s2 + $0x18] sm:$0xff]  ;;  %v58_v1 = vld [vmem:[%s365_s2 + $0x10] sm:$0xff]  ;;  %vm63_vm0 = vcmask 130048   ;;  %vm87_vm1 = vcmask 261120  }
   0xc   :  { %v62_v2 = vld [vmem:[%s366_s3 + $0x8] sm:$0xff]  ;;  %103 = vmatpush.msra.mxu1 %v59_v0  ;;  %v61_v3 = vld [vmem:[%s366_s3] sm:$0xff]  ;;  %v120_v8 = vld [vmem:[%s368_s5 + $0x18] sm:$0xff]  ;;  %s168_s9 = sshll.u32 %s370_s7, 4  ;;  %s169_s9 = int_to_ptr.hbm [resolvable:$true] %s168_s9 }
   0xd   :  { %81 = vmatpush.msra.mxu0 %v62_v2  ;;  %v57_v4 = vld [vmem:[%s365_s2 + $0x8] sm:$0xff]  ;;  %v56_v6 = vld [vmem:[%s365_s2] sm:$0xff]  ;;  %140 = vmatpush.msra.mxu2 %v120_v8  ;;  %v119_v9 = vld [vmem:[%s368_s5 + $0x10] sm:$0xff] }
   0xe   :  { %v60_v5 = vld [vmem:[#allocation5] sm:$0xff]  ;;  %104 = vmatpush.msra.mxu1 %v58_v1  ;;  %v55_v7 = vld [vmem:[#allocation2] sm:$0xff] }
   0xf   :  { %82 = vmatpush.msra.mxu0 %v61_v3  ;;  %141 = vmatpush.msra.mxu2 %v119_v9  ;;  %v118_v10 = vld [vmem:[%s368_s5 + $0x8] sm:$0xff]  ;;  %v117_v11 = vld [vmem:[%s368_s5] sm:$0xff] }
  0x10   :  { %179 = vmatmul.msk.f32.vlgmr.msra.gmra.mxu0 %vm63_vm0, %v60_v5  ;;  %105 = vmatpush.msra.mxu1 %v57_v4  ;;  %v185_v13 = vld [vmem:[%s367_s4] ss:$0 sm:$0xff]  ;;  %s271_s4 = smov [#allocation7]  }
  0x11   :  { %142 = vmatpush.msra.mxu2 %v118_v10  ;;  %v186_v18 = vld [vmem:[%s369_s6] ss:$0 sm:$0xff]  ;;  %s166_s5 = sshll.u32 %s271_s4, 4  ;;  %s167_s5 = int_to_ptr.vmem [resolvable:$true] %s166_s5 }
  0x12   :  { %106 = vmatpush.msra.mxu1 %v56_v6 }
  0x13   :  { %180 = vmatmul.msk.f32.vlgmr.msra.gmra.mxu1 %vm87_vm1, %v55_v7  ;;  %143 = vmatpush.msra.mxu2 %v117_v11 }
  0x8d   :  { %v84_v12 = vpop.f32.mrf.mxu0 }
  0x90   :  { %v108_v14 = vpop.f32.mrf.mxu1 }
  0x91   :  { %v109_v15 = vadd.f32 %v108_v14, %v84_v12 }
  0x93   :  { %v115_v16 = vadd.f32 %v185_v13, %v109_v15 }
  0x95   :  { %v116_v17 = vmax.f32 %v115_v16, 0.0 }
  0x97   :  { %181 = vmatmul.msk.f32.vlgmr.msra.gmra.mxu2 %vm87_vm1, %v116_v17 }
 0x11a   :  { %v145_v19 = vpop.f32.mrf.mxu2 }
 0x11b   :  { %v146_v20 = vadd.f32 %v186_v18, %v145_v19 }
 0x11d   :  { %v148_v21 = vsel %vm63_vm0, %v146_v20, -inf }
 0x11e   :  { %149 = vmax.xlane.f32.xlu0 %v148_v21 }
 0x191   :  { %v150_v22 = vpop.xlane.xlu0 %149 }
 0x192   :  { %v151_v23 = vsub.f32 %v146_v20, %v150_v22 }
 0x194   :  { %v152_v24 = vmul.f32 1.442695, %v151_v23 }
 0x196   :  { %187 = vpow2.f32 %v152_v24 }
 0x19c   :  { %v188_v25 = vpop.eup %187 }
 0x19d   :  { %v154_v26 = vsel %vm63_vm0, %v188_v25, 0.0 }
 0x19e   :  { %155 = vadd.xlane.f32.xlu0 %v154_v26 }
 0x211   :  { %v156_v27 = vpop.xlane.xlu0 %155 }
 0x212   :  { %189 = vlog2.f32 %v156_v27 }
 0x218   :  { %v190_v28 = vpop.eup %189 }
 0x219   :  { %v158_v29 = vmul.f32 0.6931472, %v190_v28 }
 0x21b   :  { %v159_v30 = vsub.f32 %v151_v23, %v158_v29 }
 0x21d   :  { %160 = vst.msk [vmem:[#allocation7] sm:$0xff] %vm63_vm0, %v159_v30 }
 0x21e   :  { %171 = dma.vmem_to_hbm [thread:$0]  %s167_s5, 128, %s169_s9, [#allocation4]  }
 0x21f   :  { %267 = dma.done.wait [#allocation4], 128  }
 0x220   :  { %268 = vsyncadd [#allocation4], 4294967168 }
 0x221   :  { %176 = vsyncpa [#allocation3], 1 }
 0x222   :  { %177 = vsyncpa [#allocation6], 1 }
 0x223   :  { %178 = vsyncpa [#allocation4], 1 }

</bundles_post_ra>
